<compile_context>
chip_gen: v6e
topology: v6e:2x2x1
jax: 0.10.0
libtpu: 0.0.40
codegen_flags: <defaults>
</compile_context>

<pallas_src>
import math

import jax
import jax.numpy as jnp
from jax import lax
from jax.experimental import pallas as pl
from jax.experimental.pallas import tpu as pltpu


# ----------------------------- in-kernel math ------------------------------ #

def _gelu(v):
    # tanh-approximation GELU: bulk of the work lands on the (otherwise idle)
    # EUP slot; ~5 VALU ops per vreg vs ~15 for the erf polynomial chain.
    c = math.sqrt(2.0 / math.pi)
    return 0.5 * v * (1.0 + jnp.tanh(c * (v + 0.044715 * (v * v * v))))


# --------------------------------- kernel ---------------------------------- #

def bottleneck_kernel(x_ref,            # (H, W*Cin)          bf16
                      w1_ref, b1_ref,   # (W*Cin, W*width) bf16, (1, W*width) f32
                      m2_ref, b2_ref,   # (3, W*width, W*width) bf16, (1, W*width) f32
                      w3_ref, b3_ref,   # (W*width, W*Cout) bf16, (1, W*Cout) f32
                      o_ref,            # (H, W*Cout)          f32
                      yp_ref):          # (H+2, W*width)       f32 scratch
    H = x_ref.shape[0]
    WW = w1_ref.shape[1]                # W * width lanes

    x_tile = x_ref[...]                 # (H, W*Cin) bf16, lane-dense

    # ---- conv1 (1x1): block-diagonal matmul, BN scale folded -> bias -> GELU
    y = jnp.dot(x_tile, w1_ref[...], preferred_element_type=jnp.float32)
    y = _gelu(y + b1_ref[...])          # (H, W*width) f32, lane-dense

    # ---- stage rows into the row-padded scratch.  Only the two 1-row borders
    # need zeroing each step (interior is fully overwritten); the dx zero
    # padding is folded into the banded conv2 weights, so no pad columns exist.
    zero_row = jnp.zeros((1, WW), jnp.float32)
    yp_ref[0:1, :] = zero_row
    yp_ref[H + 1:H + 2, :] = zero_row
    yp_ref[1:H + 1, :] = y

    # ---- conv2 (3x3, stride 1, SAME): three banded matmuls, one per kernel
    # row dy.  LHS operands are plain sublane-offset slices (no im2col, no
    # concat, no relayout); BN scale folded into m2.
    z = jnp.dot(yp_ref[0:H, :].astype(jnp.bfloat16), m2_ref[0],
                preferred_element_type=jnp.float32)
    z = z + jnp.dot(yp_ref[1:H + 1, :].astype(jnp.bfloat16), m2_ref[1],
                    preferred_element_type=jnp.float32)
    z = z + jnp.dot(yp_ref[2:H + 2, :].astype(jnp.bfloat16), m2_ref[2],
                    preferred_element_type=jnp.float32)
    z = _gelu(z + b2_ref[...])          # (H, W*width) f32

    # ---- conv3 (1x1): block-diagonal matmul -> bias -> residual -> GELU,
    # stored lane-dense (W*Cout = 256 lanes, unmasked vst).
    o = jnp.dot(z.astype(jnp.bfloat16), w3_ref[...],
                preferred_element_type=jnp.float32)          # (H, W*Cout) f32
    o_ref[...] = _gelu(o + b3_ref[...] + x_tile.astype(jnp.float32))


# ----------------------- host-side weight preparation ----------------------- #

def prepare_params(params, W):
    """Fold BN scales into the conv weights and build the lane-dense
    (block-diagonal / banded) bf16 operands the kernel consumes."""
    w1, s1, b1, w2, s2, b2, w3, s3, b3 = params
    eye_w = jnp.eye(W, dtype=jnp.float32)

    # 1x1 convs on the (H, W*C) lane-dense layout == block-diagonal matmuls.
    w1bd = jnp.kron(eye_w, w1 * s1).astype(jnp.bfloat16)     # (W*Cin,  W*width)
    w3bd = jnp.kron(eye_w, w3 * s3).astype(jnp.bfloat16)     # (W*width, W*Cout)

    # 3x3 conv: one banded matrix per kernel row dy.  The dx shift and its
    # zero padding are encoded via off-diagonal shift matrices (out-of-range
    # taps simply have no entries).
    w2s = w2 * s2                                            # (3,3,width,width)
    m2 = jnp.stack([
        sum(jnp.kron(jnp.eye(W, k=1 - dx, dtype=jnp.float32), w2s[dy, dx])
            for dx in range(3))
        for dy in range(3)
    ]).astype(jnp.bfloat16)                                  # (3, W*width, W*width)

    b1t = jnp.tile(b1, (1, W)).astype(jnp.float32)           # (1, W*width)
    b2t = jnp.tile(b2, (1, W)).astype(jnp.float32)           # (1, W*width)
    b3t = jnp.tile(b3, (1, W)).astype(jnp.float32)           # (1, W*Cout)
    return w1bd, b1t, m2, b2t, w3bd, b3t


# -------------------------------- wrapper ----------------------------------- #

@jax.jit
def custom_block(x, prepped):
    w1bd, b1t, m2, b2t, w3bd, b3t = prepped
    N, H, W, Cin = x.shape
    width = m2.shape[2] // W
    Cout = w3bd.shape[1] // W
    assert Cin == Cout, "no-downsample residual requires Cin == Cout"

    # Lane-dense bf16 presentation of the input (row-major compatible reshape).
    x2 = x.astype(jnp.bfloat16).reshape(N * H, W * Cin)

    const2 = lambda a: pl.BlockSpec(a.shape, lambda n: (0, 0))   # resident weights
    const3 = lambda a: pl.BlockSpec(a.shape, lambda n: (0, 0, 0))

    out2 = pl.pallas_call(
        bottleneck_kernel,
        out_shape=jax.ShapeDtypeStruct((N * H, W * Cout), jnp.float32),
        grid=(N,),
        in_specs=[pl.BlockSpec((H, W * Cin), lambda n: (n, 0)),
                  const2(w1bd), const2(b1t),
                  const3(m2), const2(b2t),
                  const2(w3bd), const2(b3t)],
        out_specs=pl.BlockSpec((H, W * Cout), lambda n: (n, 0)),
        scratch_shapes=[pltpu.VMEM((H + 2, W * width), jnp.float32)],
        compiler_params=pltpu.CompilerParams(
            dimension_semantics=("parallel",)),
    )(x2, w1bd, b1t, m2, b2t, w3bd, b3t)

    return out2.reshape(N, H, W, Cout)


# ------------------------- parameters & reference --------------------------- #

def make_params(key, inplanes, planes, base_width=64, groups=1):
    """Deterministic synthetic params. Conv weights stored IO / HWIO; BN folded."""
    width = int(planes * (base_width / 64.0)) * groups
    cout = planes * 4  # expansion = 4
    ks = jax.random.split(key, 15)

    def bn_fold(kg, kb, km, kv, c):
        gamma = 1.0 + 0.1 * jax.random.normal(kg, (c,), jnp.float32)
        beta = 0.1 * jax.random.normal(kb, (c,), jnp.float32)
        mean = 0.1 * jax.random.normal(km, (c,), jnp.float32)
        var = jnp.abs(jax.random.normal(kv, (c,), jnp.float32)) + 0.5
        scale = gamma / jnp.sqrt(var + 1e-5)
        bias = beta - mean * scale
        return scale.reshape(1, c), bias.reshape(1, c)

    w1 = 0.1 * jax.random.normal(ks[0], (inplanes, width), jnp.float32)     # 1x1
    w2 = 0.1 * jax.random.normal(ks[1], (3, 3, width, width), jnp.float32)  # 3x3 HWIO
    w3 = 0.1 * jax.random.normal(ks[2], (width, cout), jnp.float32)         # 1x1
    s1, b1 = bn_fold(ks[3], ks[4], ks[5], ks[6], width)
    s2, b2 = bn_fold(ks[7], ks[8], ks[9], ks[10], width)
    s3, b3 = bn_fold(ks[11], ks[12], ks[13], ks[14], cout)
    return (w1, s1, b1, w2, s2, b2, w3, s3, b3)


def reference(x, params):
    """Pure-JAX NHWC reference using lax.conv (f32, HIGHEST precision)."""
    w1, s1, b1, w2, s2, b2, w3, s3, b3 = params
    dn = ('NHWC', 'HWIO', 'NHWC')
    hp = lax.Precision.HIGHEST
    gelu = lambda v: 0.5 * v * (1.0 + lax.erf(v * (1.0 / math.sqrt(2.0))))
    y = lax.conv_general_dilated(x, w1[None, None], (1, 1), 'VALID',
                                 dimension_numbers=dn, precision=hp)
    y = gelu(y * s1 + b1)
    y = lax.conv_general_dilated(y, w2, (1, 1), 'SAME',
                                 dimension_numbers=dn, precision=hp)
    y = gelu(y * s2 + b2)
    y = lax.conv_general_dilated(y, w3[None, None], (1, 1), 'VALID',
                                 dimension_numbers=dn, precision=hp)
    return gelu(y * s3 + b3 + x)


# ---------------------------------- main ------------------------------------ #

if __name__ == "__main__":
    # inplanes=16, planes=4 -> width=4, out channels=planes*4=16, so the
    # identity add needs no downsample (matches downsample=None, stride=1).
    inplanes, planes = 16, 4
    N, H, W = 2, 16, 16

    key = jax.random.PRNGKey(0)
    kx, kp = jax.random.split(key)
    x = jax.random.normal(kx, (N, H, W, inplanes), jnp.float32)   # NHWC
    params = make_params(kp, inplanes, planes)
    prepped = prepare_params(params, W)

    out = jax.block_until_ready(custom_block(x, prepped))
    ref = reference(x, params)

    assert out.shape == (N, H, W, planes * 4)
    # bf16 inputs/weights + tanh-approx GELU => relaxed tolerance vs f32 ref.
    err = float(jnp.max(jnp.abs(out - ref)))
    assert err < 4e-2, f"max abs err = {err}"

    print("KERNEL_OK")
</pallas_src>

<mosaic_0001>
module attributes {stable_mosaic.version = 11 : i64} {
  func.func @bottleneck_kernel(%arg0: i32, %arg1: memref<16x256xbf16, #tpu.memory_space<vmem>>, %arg2: memref<256x64xbf16, #tpu.memory_space<vmem>>, %arg3: memref<1x64xf32, #tpu.memory_space<vmem>>, %arg4: memref<3x64x64xbf16, #tpu.memory_space<vmem>>, %arg5: memref<1x64xf32, #tpu.memory_space<vmem>>, %arg6: memref<64x256xbf16, #tpu.memory_space<vmem>>, %arg7: memref<1x256xf32, #tpu.memory_space<vmem>>, %arg8: memref<16x256xf32, #tpu.memory_space<vmem>>, %arg9: memref<18x64xf32, #tpu.memory_space<vmem>>) attributes {dimension_semantics = [#tpu.dimension_semantics<parallel>], iteration_bounds = array<i64: 2>, scalar_prefetch = 0 : i64, scratch_operands = 1 : i64, tpu.core_type = #tpu.core_type<tc>, window_params = [{transform_indices = @transform_0, window_bounds = array<i64: 16, 256>}, {pipeline_mode = #tpu.pipeline_mode<synchronous>, transform_indices = @transform_1, window_bounds = array<i64: 256, 64>}, {pipeline_mode = #tpu.pipeline_mode<synchronous>, transform_indices = @transform_2, window_bounds = array<i64: 1, 64>}, {pipeline_mode = #tpu.pipeline_mode<synchronous>, transform_indices = @transform_3, window_bounds = array<i64: 3, 64, 64>}, {pipeline_mode = #tpu.pipeline_mode<synchronous>, transform_indices = @transform_4, window_bounds = array<i64: 1, 64>}, {pipeline_mode = #tpu.pipeline_mode<synchronous>, transform_indices = @transform_5, window_bounds = array<i64: 64, 256>}, {pipeline_mode = #tpu.pipeline_mode<synchronous>, transform_indices = @transform_6, window_bounds = array<i64: 1, 256>}, {transform_indices = @transform_7, window_bounds = array<i64: 16, 256>}]} {
    %c0 = arith.constant 0 : index
    %c0_0 = arith.constant 0 : index
    %0 = vector.load %arg1[%c0, %c0_0] : memref<16x256xbf16, #tpu.memory_space<vmem>>, vector<16x256xbf16>
    %c0_1 = arith.constant 0 : index
    %c0_2 = arith.constant 0 : index
    %1 = vector.load %arg2[%c0_1, %c0_2] : memref<256x64xbf16, #tpu.memory_space<vmem>>, vector<256x64xbf16>
    %cst = arith.constant dense<0.000000e+00> : vector<16x64xf32>
    %2 = tpu.matmul %0, %1, %cst {dimension_numbers = #tpu.dot_dimension_numbers<[1], [0], [0], [1], [0, 0, 1, 1], [], []>} : vector<16x256xbf16>, vector<256x64xbf16>, vector<16x64xf32> -> vector<16x64xf32>
    %c0_3 = arith.constant 0 : index
    %c0_4 = arith.constant 0 : index
    %3 = vector.load %arg3[%c0_3, %c0_4] : memref<1x64xf32, #tpu.memory_space<vmem>>, vector<1x64xf32>
    %4 = vector.broadcast %3 : vector<1x64xf32> to vector<16x64xf32>
    %5 = arith.addf %2, %4 : vector<16x64xf32>
    %cst_5 = arith.constant 5.000000e-01 : f32
    %6 = vector.broadcast %cst_5 : f32 to vector<16x64xf32>
    %7 = arith.mulf %6, %5 : vector<16x64xf32>
    %8 = arith.mulf %5, %5 : vector<16x64xf32>
    %9 = arith.mulf %8, %5 : vector<16x64xf32>
    %cst_6 = arith.constant 4.471500e-02 : f32
    %10 = vector.broadcast %cst_6 : f32 to vector<16x64xf32>
    %11 = arith.mulf %10, %9 : vector<16x64xf32>
    %12 = arith.addf %5, %11 : vector<16x64xf32>
    %cst_7 = arith.constant 0.797884583 : f32
    %13 = vector.broadcast %cst_7 : f32 to vector<16x64xf32>
    %14 = arith.mulf %13, %12 : vector<16x64xf32>
    %15 = math.tanh %14 : vector<16x64xf32>
    %cst_8 = arith.constant 1.000000e+00 : f32
    %16 = vector.broadcast %cst_8 : f32 to vector<16x64xf32>
    %17 = arith.addf %16, %15 : vector<16x64xf32>
    %18 = arith.mulf %7, %17 : vector<16x64xf32>
    %cst_9 = arith.constant 0.000000e+00 : f32
    %19 = vector.broadcast %cst_9 : f32 to vector<1x64xf32>
    %c0_10 = arith.constant 0 : index
    %c0_11 = arith.constant 0 : index
    %20 = vector.load %arg9[%c0_10, %c0_11] : memref<18x64xf32, #tpu.memory_space<vmem>>, vector<1x64xf32>
    tpu.vector_store %arg9[%c0_10, %c0_11], %19 {strides = array<i32>} : memref<18x64xf32, #tpu.memory_space<vmem>>, vector<1x64xf32>,
    %c17 = arith.constant 17 : index
    %c0_12 = arith.constant 0 : index
    %21 = vector.load %arg9[%c17, %c0_12] : memref<18x64xf32, #tpu.memory_space<vmem>>, vector<1x64xf32>
    tpu.vector_store %arg9[%c17, %c0_12], %19 {strides = array<i32>} : memref<18x64xf32, #tpu.memory_space<vmem>>, vector<1x64xf32>,
    %c1 = arith.constant 1 : index
    %c0_13 = arith.constant 0 : index
    %22 = vector.load %arg9[%c1, %c0_13] : memref<18x64xf32, #tpu.memory_space<vmem>>, vector<16x64xf32>
    tpu.vector_store %arg9[%c1, %c0_13], %18 {strides = array<i32>} : memref<18x64xf32, #tpu.memory_space<vmem>>, vector<16x64xf32>,
    %c0_14 = arith.constant 0 : index
    %c0_15 = arith.constant 0 : index
    %23 = vector.load %arg9[%c0_14, %c0_15] : memref<18x64xf32, #tpu.memory_space<vmem>>, vector<16x64xf32>
    %24 = arith.truncf %23 : vector<16x64xf32> to vector<16x64xbf16>
    %c0_16 = arith.constant 0 : index
    %c0_17 = arith.constant 0 : index
    %c0_18 = arith.constant 0 : index
    %25 = vector.load %arg4[%c0_16, %c0_17, %c0_18] : memref<3x64x64xbf16, #tpu.memory_space<vmem>>, vector<1x64x64xbf16>
    %26 = vector.shape_cast %25 : vector<1x64x64xbf16> to vector<64x64xbf16>
    %cst_19 = arith.constant dense<0.000000e+00> : vector<16x64xf32>
    %27 = tpu.matmul %24, %26, %cst_19 {dimension_numbers = #tpu.dot_dimension_numbers<[1], [0], [0], [1], [0, 0, 1, 1], [], []>} : vector<16x64xbf16>, vector<64x64xbf16>, vector<16x64xf32> -> vector<16x64xf32>
    %c1_20 = arith.constant 1 : index
    %c0_21 = arith.constant 0 : index
    %28 = vector.load %arg9[%c1_20, %c0_21] : memref<18x64xf32, #tpu.memory_space<vmem>>, vector<16x64xf32>
    %29 = arith.truncf %28 : vector<16x64xf32> to vector<16x64xbf16>
    %c1_22 = arith.constant 1 : index
    %c0_23 = arith.constant 0 : index
    %c0_24 = arith.constant 0 : index
    %30 = vector.load %arg4[%c1_22, %c0_23, %c0_24] : memref<3x64x64xbf16, #tpu.memory_space<vmem>>, vector<1x64x64xbf16>
    %31 = vector.shape_cast %30 : vector<1x64x64xbf16> to vector<64x64xbf16>
    %cst_25 = arith.constant dense<0.000000e+00> : vector<16x64xf32>
    %32 = tpu.matmul %29, %31, %cst_25 {dimension_numbers = #tpu.dot_dimension_numbers<[1], [0], [0], [1], [0, 0, 1, 1], [], []>} : vector<16x64xbf16>, vector<64x64xbf16>, vector<16x64xf32> -> vector<16x64xf32>
    %33 = arith.addf %27, %32 : vector<16x64xf32>
    %c2 = arith.constant 2 : index
    %c0_26 = arith.constant 0 : index
    %34 = vector.load %arg9[%c2, %c0_26] : memref<18x64xf32, #tpu.memory_space<vmem>>, vector<16x64xf32>
    %35 = arith.truncf %34 : vector<16x64xf32> to vector<16x64xbf16>
    %c2_27 = arith.constant 2 : index
    %c0_28 = arith.constant 0 : index
    %c0_29 = arith.constant 0 : index
    %36 = vector.load %arg4[%c2_27, %c0_28, %c0_29] : memref<3x64x64xbf16, #tpu.memory_space<vmem>>, vector<1x64x64xbf16>
    %37 = vector.shape_cast %36 : vector<1x64x64xbf16> to vector<64x64xbf16>
    %cst_30 = arith.constant dense<0.000000e+00> : vector<16x64xf32>
    %38 = tpu.matmul %35, %37, %cst_30 {dimension_numbers = #tpu.dot_dimension_numbers<[1], [0], [0], [1], [0, 0, 1, 1], [], []>} : vector<16x64xbf16>, vector<64x64xbf16>, vector<16x64xf32> -> vector<16x64xf32>
    %39 = arith.addf %33, %38 : vector<16x64xf32>
    %c0_31 = arith.constant 0 : index
    %c0_32 = arith.constant 0 : index
    %40 = vector.load %arg5[%c0_31, %c0_32] : memref<1x64xf32, #tpu.memory_space<vmem>>, vector<1x64xf32>
    %41 = vector.broadcast %40 : vector<1x64xf32> to vector<16x64xf32>
    %42 = arith.addf %39, %41 : vector<16x64xf32>
    %cst_33 = arith.constant 5.000000e-01 : f32
    %43 = vector.broadcast %cst_33 : f32 to vector<16x64xf32>
    %44 = arith.mulf %43, %42 : vector<16x64xf32>
    %45 = arith.mulf %42, %42 : vector<16x64xf32>
    %46 = arith.mulf %45, %42 : vector<16x64xf32>
    %cst_34 = arith.constant 4.471500e-02 : f32
    %47 = vector.broadcast %cst_34 : f32 to vector<16x64xf32>
    %48 = arith.mulf %47, %46 : vector<16x64xf32>
    %49 = arith.addf %42, %48 : vector<16x64xf32>
    %cst_35 = arith.constant 0.797884583 : f32
    %50 = vector.broadcast %cst_35 : f32 to vector<16x64xf32>
    %51 = arith.mulf %50, %49 : vector<16x64xf32>
    %52 = math.tanh %51 : vector<16x64xf32>
    %cst_36 = arith.constant 1.000000e+00 : f32
    %53 = vector.broadcast %cst_36 : f32 to vector<16x64xf32>
    %54 = arith.addf %53, %52 : vector<16x64xf32>
    %55 = arith.mulf %44, %54 : vector<16x64xf32>
    %56 = arith.truncf %55 : vector<16x64xf32> to vector<16x64xbf16>
    %c0_37 = arith.constant 0 : index
    %c0_38 = arith.constant 0 : index
    %57 = vector.load %arg6[%c0_37, %c0_38] : memref<64x256xbf16, #tpu.memory_space<vmem>>, vector<64x256xbf16>
    %cst_39 = arith.constant dense<0.000000e+00> : vector<16x256xf32>
    %58 = tpu.matmul %56, %57, %cst_39 {dimension_numbers = #tpu.dot_dimension_numbers<[1], [0], [0], [1], [0, 0, 1, 1], [], []>} : vector<16x64xbf16>, vector<64x256xbf16>, vector<16x256xf32> -> vector<16x256xf32>
    %c0_40 = arith.constant 0 : index
    %c0_41 = arith.constant 0 : index
    %59 = vector.load %arg7[%c0_40, %c0_41] : memref<1x256xf32, #tpu.memory_space<vmem>>, vector<1x256xf32>
    %60 = vector.broadcast %59 : vector<1x256xf32> to vector<16x256xf32>
    %61 = arith.addf %58, %60 : vector<16x256xf32>
    %62 = arith.extf %0 : vector<16x256xbf16> to vector<16x256xf32>
    %63 = arith.addf %61, %62 : vector<16x256xf32>
    %cst_42 = arith.constant 5.000000e-01 : f32
    %64 = vector.broadcast %cst_42 : f32 to vector<16x256xf32>
    %65 = arith.mulf %64, %63 : vector<16x256xf32>
    %66 = arith.mulf %63, %63 : vector<16x256xf32>
    %67 = arith.mulf %66, %63 : vector<16x256xf32>
    %cst_43 = arith.constant 4.471500e-02 : f32
    %68 = vector.broadcast %cst_43 : f32 to vector<16x256xf32>
    %69 = arith.mulf %68, %67 : vector<16x256xf32>
    %70 = arith.addf %63, %69 : vector<16x256xf32>
    %cst_44 = arith.constant 0.797884583 : f32
    %71 = vector.broadcast %cst_44 : f32 to vector<16x256xf32>
    %72 = arith.mulf %71, %70 : vector<16x256xf32>
    %73 = math.tanh %72 : vector<16x256xf32>
    %cst_45 = arith.constant 1.000000e+00 : f32
    %74 = vector.broadcast %cst_45 : f32 to vector<16x256xf32>
    %75 = arith.addf %74, %73 : vector<16x256xf32>
    %76 = arith.mulf %65, %75 : vector<16x256xf32>
    %c0_46 = arith.constant 0 : index
    %c0_47 = arith.constant 0 : index
    %77 = vector.load %arg8[%c0_46, %c0_47] : memref<16x256xf32, #tpu.memory_space<vmem>>, vector<16x256xf32>
    tpu.vector_store %arg8[%c0_46, %c0_47], %76 {strides = array<i32>} : memref<16x256xf32, #tpu.memory_space<vmem>>, vector<16x256xf32>,
    return
  }
  func.func @transform_0(%arg0: i32) -> (i32, i32) {
    %c0_i32 = arith.constant 0 : i32
    %c0_i32_0 = arith.constant 0 : i32
    return %arg0, %c0_i32 : i32, i32
  }
  func.func @transform_1(%arg0: i32) -> (i32, i32) {
    %c0_i32 = arith.constant 0 : i32
    %c0_i32_0 = arith.constant 0 : i32
    %c0_i32_1 = arith.constant 0 : i32
    return %c0_i32, %c0_i32_0 : i32, i32
  }
  func.func @transform_2(%arg0: i32) -> (i32, i32) {
    %c0_i32 = arith.constant 0 : i32
    %c0_i32_0 = arith.constant 0 : i32
    %c0_i32_1 = arith.constant 0 : i32
    return %c0_i32, %c0_i32_0 : i32, i32
  }
  func.func @transform_3(%arg0: i32) -> (i32, i32, i32) {
    %c0_i32 = arith.constant 0 : i32
    %c0_i32_0 = arith.constant 0 : i32
    %c0_i32_1 = arith.constant 0 : i32
    %c0_i32_2 = arith.constant 0 : i32
    return %c0_i32, %c0_i32_0, %c0_i32_1 : i32, i32, i32
  }
  func.func @transform_4(%arg0: i32) -> (i32, i32) {
    %c0_i32 = arith.constant 0 : i32
    %c0_i32_0 = arith.constant 0 : i32
    %c0_i32_1 = arith.constant 0 : i32
    return %c0_i32, %c0_i32_0 : i32, i32
  }
  func.func @transform_5(%arg0: i32) -> (i32, i32) {
    %c0_i32 = arith.constant 0 : i32
    %c0_i32_0 = arith.constant 0 : i32
    %c0_i32_1 = arith.constant 0 : i32
    return %c0_i32, %c0_i32_0 : i32, i32
  }
  func.func @transform_6(%arg0: i32) -> (i32, i32) {
    %c0_i32 = arith.constant 0 : i32
    %c0_i32_0 = arith.constant 0 : i32
    %c0_i32_1 = arith.constant 0 : i32
    return %c0_i32, %c0_i32_0 : i32, i32
  }
  func.func @transform_7(%arg0: i32) -> (i32, i32) {
    %c0_i32 = arith.constant 0 : i32
    %c0_i32_0 = arith.constant 0 : i32
    return %arg0, %c0_i32 : i32, i32
  }
}

</mosaic_0001>

<bundles_post_ra>
// kernel: custom_block.1
= control target key start
LH: loop header
LB: loop body
LE: loop exit
PB: predicated region body
PF: predicated region fallthrough
CT: control target
= control target key end

     0   :  { %s1249_s24 = smov 0   ;;  %s1425_s0 = inlined_call_operand.vmem [shape: bf16[32,256], index: 0, kind: input, shape index: {}]   ;;  %s1426_s1 = inlined_call_operand.vmem [shape: bf16[256,64], index: 1, kind: input, shape index: {}]   ;;  %s1427_s2 = inlined_call_operand.vmem [shape: f32[1,64], index: 2, kind: input, shape index: {}]   ;;  %s1428_s3 = inlined_call_operand.vmem [shape: bf16[3,64,64], index: 3, kind: input, shape index: {}]   ;;  %s1429_s4 = inlined_call_operand.vmem [shape: f32[1,64], index: 4, kind: input, shape index: {}]   ;;  %s1430_s5 = inlined_call_operand.vmem [shape: bf16[64,256], index: 5, kind: input, shape index: {}]   ;;  %s1431_s6 = inlined_call_operand.vmem [shape: f32[1,256], index: 6, kind: input, shape index: {}]   ;;  %s1432_s7 = inlined_call_operand.vmem [shape: f32[32,256], index: 7, kind: output, shape index: {}]  }
   0x1 LB: > { %s981_s25 = sadd.s32 4294967295, %s1204_s24   ;;  %p985_p0 = scmp.ge.s32.totalorder %s1204_s24, 1  ;;  %s1204_s24 = sphi %s1249_s24, %s17_s24  }
   0x2   : > { %p239_p1 = scmp.lt.s32.totalorder %s1204_s24, 3 }
   0x4   : > { %p240_p2 = pnand %p985_p0, %p239_p1 }
   0x5   : > { %s986_s28 = sshll.u32 (!%p240_p2), %s981_s25, 1 }
   0x6   : > { %243 = sbr.rel (%p240_p2) target bundleno = 766 (0x2fe), region = 48  ;;  %p274_p3 = scmp.lt.s32.totalorder (!%p240_p2), %s986_s28, 3 }
   0xb   : > { %v1140_v0 = vld [vmem:[%s1426_s1 + $0x78] sm:$0xff]   ;;  %v1142_v2 = vld [vmem:[%s1426_s1 + $0x70] sm:$0xff]   ;;  %v1144_v4 = vld [vmem:[%s1426_s1 + $0x68] sm:$0xff]   ;;  %s1434_s28 = smov (!%p274_p3, %s986_s28), 3  ;;  %v1206_v21 = vmov 0.0   ;;  %vm494_vm0 = vcmask 516096  }
   0xc   : > { %v1141_v1 = vld [vmem:[%s1426_s1 + $0x38] sm:$0xff]   ;;  %1056 = vmatprep.subr.bf16.mxu0 %v1140_v0  ;;  %v1143_v3 = vld [vmem:[%s1426_s1 + $0x30] sm:$0xff]   ;;  %v1145_v5 = vld [vmem:[%s1426_s1 + $0x28] sm:$0xff]   ;;  %s1054_s18 = sshll.u32 %s1434_s28, 3  ;;  %1093 = vmatprep.subr.bf16.mxu1 %v1206_v21  ;;  %496 = vst.msk [vmem:[#allocation2 + $0x11] sm:$0x1] %vm494_vm0, %v1206_v21 }
   0xd   : > { %1057 = vmatpush3.bf16.msra.mxu0 %v1141_v1  ;;  %v1146_v6 = vld [vmem:[%s1426_s1 + $0x60] sm:$0xff]   ;;  %v1148_v8 = vld [vmem:[%s1426_s1 + $0x58] sm:$0xff]   ;;  %s278_s26 = scalar_lea.vmem %s1425_s0, %s1054_s18  ;;  %v1150_v10 = vld [vmem:[%s1426_s1 + $0x50] sm:$0xff]   ;;  %495 = vst.msk [vmem:[#allocation2] sm:$0x1] %vm494_vm0, %v1206_v21  ;;  %vm1207_vm1 = vmmov 0  }
   0xe   : > { %1058 = vmatprep.subr.bf16.mxu0 %v1142_v2  ;;  %v1147_v7 = vld [vmem:[%s1426_s1 + $0x20] sm:$0xff]   ;;  %v1149_v9 = vld [vmem:[%s1426_s1 + $0x18] sm:$0xff]   ;;  %v1298_v12 = vld [vmem:[%s278_s26 + $0x8] sm:$0xff]  ;;  %1101 = vmatprep.mubr.msk.bf16.mxu1 %vm1207_vm1, %v1206_v21  ;;  %vm497_vm2 = vcmask 523264   ;;  %s1055_s23 = sshll.u32 %s1434_s28, 4 }
   0xf   : > { %v1296_v11 = vld [vmem:[%s278_s26] sm:$0xff]  ;;  %v1151_v13 = vld [vmem:[%s1426_s1 + $0x10] sm:$0xff]   ;;  %v1152_v15 = vld [vmem:[%s1426_s1 + $0x48] sm:$0xff]   ;;  %s285_s27 = scalar_lea.vmem %s1432_s7, %s1055_s23 }
  0x10   : > { %v994_v14 = vcombine.high %v1296_v11, %v1298_v12  ;;  %v1153_v16 = vld [vmem:[%s1426_s1 + $0x8] sm:$0xff]   ;;  %v1154_v17 = vld [vmem:[%s1426_s1 + $0x40] sm:$0xff]   ;;  %v993_v19 = vcombine.low %v1296_v11, %v1298_v12  ;;  %v1158_v20 = vld [vmem:[%s1428_s3 + $0x38] sm:$0xff]  }
  0x11   : > { %1059 = vmatpush3.bf16.msra.mxu0 %v1143_v3  ;;  %v1155_v18 = vld [vmem:[%s1426_s1] sm:$0xff]   ;;  %v1159_v22 = vld [vmem:[%s1428_s3 + $0x58] sm:$0xff]   ;;  %1094 = vmatpush3.bf16.msra.mxu1 %v1158_v20  ;;  %v1160_v23 = vld [vmem:[%s1428_s3 + $0x30] sm:$0xff]  }
  0x12   : > { %1060 = vmatprep.subr.bf16.mxu0 %v1144_v4  ;;  %467 = vmatprep.mubr.bf16.mxu0 %v994_v14  ;;  %v1161_v24 = vld [vmem:[%s1428_s3 + $0x50] sm:$0xff]   ;;  %v1162_v25 = vld [vmem:[%s1428_s3 + $0x28] sm:$0xff]   ;;  %v1164_v27 = vld [vmem:[%s1428_s3 + $0x20] sm:$0xff]  }
  0x13   : > { %1095 = vmatprep.subr.bf16.mxu1 %v1206_v21  ;;  %v1163_v26 = vld [vmem:[%s1428_s3 + $0x48] sm:$0xff]   ;;  %v1165_v28 = vld [vmem:[%s1428_s3 + $0x40] sm:$0xff]   ;;  %v1166_v57 = vld [vmem:[%s1428_s3 + $0x18] sm:$0xff]  }
  0x14   : > { %v992_v30 = vld [vmem:[%s1427_s2] ss:$0 sm:$0xff]  ;;  %v1167_v63 = vld [vmem:[%s1428_s3 + $0x10] sm:$0xff]   ;;  %v1168_v0 = vld [vmem:[%s1428_s3 + $0x8] sm:$0xff]  }
  0x15   : > { %1061 = vmatpush3.bf16.msra.mxu0 %v1145_v5  ;;  %1096 = vmatpush3.bf16.msra.mxu1 %v1160_v23  ;;  %v1169_v1 = vld [vmem:[%s1428_s3] sm:$0xff]   ;;  %v1170_v5 = vld [vmem:[%s1430_s5 + $0x30] ss:$8 sps:$4 sm:$0xff]  }
  0x16   : > { %1062 = vmatprep.subr.bf16.mxu0 %v1146_v6  ;;  %1097 = vmatprep.subr.bf16.mxu1 %v1206_v21  ;;  %v1172_v6 = vld [vmem:[%s1430_s5 + $0x34] ss:$8 sps:$4 sm:$0xff]   ;;  %v1181_v14 = vld [vmem:[%s1430_s5 + $0x4] ss:$8 sps:$4 sm:$0xff]  }
  0x19   : > { %1063 = vmatpush3.bf16.msra.mxu0 %v1147_v7  ;;  %1098 = vmatpush3.bf16.msra.mxu1 %v1162_v25  ;;  %v1175_v7 = vld [vmem:[%s1430_s5 + $0x24] ss:$8 sps:$4 sm:$0xff]  }
  0x1a   : > { %1064 = vmatprep.subr.bf16.mxu0 %v1148_v8  ;;  %1099 = vmatprep.subr.bf16.mxu1 %v1206_v21  ;;  %v1173_v8 = vld [vmem:[%s1430_s5 + $0x20] ss:$8 sps:$4 sm:$0xff]  }
  0x1d   : > { %1065 = vmatpush3.bf16.msra.mxu0 %v1149_v9  ;;  %1100 = vmatpush3.bf16.msra.mxu1 %v1164_v27  ;;  %v1208_v9 = vmov 0  }
  0x1e   : > { %1066 = vmatprep.subr.bf16.mxu0 %v1150_v10  ;;  %1105 = vmatprep.subr.bf16.mxu1 %v1206_v21  ;;  %v1178_v10 = vld [vmem:[%s1430_s5 + $0x14] ss:$8 sps:$4 sm:$0xff]  }
  0x21   : > { %1067 = vmatpush3.bf16.msra.mxu0 %v1151_v13  ;;  %v1176_v13 = vld [vmem:[%s1430_s5 + $0x10] ss:$8 sps:$4 sm:$0xff]  }
  0x22   : > { %1068 = vmatprep.subr.bf16.mxu0 %v1152_v15  ;;  %v1179_v15 = vld [vmem:[%s1430_s5] ss:$8 sps:$4 sm:$0xff]  }
  0x25   : > { %1069 = vmatpush3.bf16.msra.mxu0 %v1153_v16 }
  0x26   : > { %1070 = vmatprep.subr.bf16.mxu0 %v1154_v17 }
  0x29   : > { %1071 = vmatpush3.bf16.msra.mxu0 %v1155_v18 }
  0x2a   : > { %1117 = vmatprep.subr.bf16.mxu0 %v1206_v21 }
  0x2c   : > { %468 = vmatmul.mubr.bf16.vlgmr.msra.gmra.mxu0 %v993_v19 }
  0x2d   : > { %1118 = vmatpush3.bf16.msra.mxu0 %v1159_v22  ;;  %1125 = vmatprep.mubr.msk.bf16.mxu0 %vm1207_vm1, %v1206_v21 }
  0x2e   : > { %1119 = vmatprep.subr.bf16.mxu0 %v1206_v21 }
  0x31   : > { %1120 = vmatpush3.bf16.msra.mxu0 %v1161_v24 }
  0x32   : > { %1121 = vmatprep.subr.bf16.mxu0 %v1206_v21 }
  0x35   : > { %1122 = vmatpush3.bf16.msra.mxu0 %v1163_v26  ;;  %v1042_v26 = vld [vmem:[%s1429_s4] ss:$0 sm:$0xff] }
  0x36   : > { %1123 = vmatprep.subr.bf16.mxu0 %v1206_v21 }
  0x39   : > { %1124 = vmatpush3.bf16.msra.mxu0 %v1165_v28 }
  0xec   : > { %v1072_v29 = vpop.f32.mrf.mxu0 }
  0xee   : > { %v1073_v31 = vpop.f32.mrf.mxu0 }
  0xef   : > { %v1074_v32 = vadd.f32 %v1073_v31, %v1072_v29 }
  0xf0   : > { %v1075_v33 = vpop.f32.mrf.mxu0 }
  0xf1   : > { %v470_v34 = vadd.f32 %v1074_v32, %v992_v30 }
  0xf2   : > { %v1076_v35 = vpop.f32.mrf.mxu0 }
  0xf3   : > { %v478_v36 = vmul.f32 %v470_v34, %v470_v34  ;;  %v1077_v37 = vadd.f32 %v1076_v35, %v1075_v33  ;;  %v476_v49 = vmul.f32 0.5, %v470_v34 }
  0xf5   : > { %v480_v38 = vmul.f32 %v478_v36, %v470_v34  ;;  %v473_v39 = vadd.f32 %v1077_v37, %v992_v30 }
  0xf7   : > { %v482_v40 = vmul.f32 0.044715, %v480_v38  ;;  %v479_v41 = vmul.f32 %v473_v39, %v473_v39  ;;  %v477_v53 = vmul.f32 0.5, %v473_v39 }
  0xf9   : > { %v484_v42 = vadd.f32 %v482_v40, %v470_v34  ;;  %v481_v43 = vmul.f32 %v479_v41, %v473_v39 }
  0xfb   : > { %v486_v44 = vmul.f32 0.7978846, %v484_v42  ;;  %v483_v45 = vmul.f32 0.044715, %v481_v43 }
  0xfd   : > { %1182 = vtanh.f32 %v486_v44  ;;  %v485_v46 = vadd.f32 %v483_v45, %v473_v39 }
  0xff   : > { %v487_v47 = vmul.f32 0.7978846, %v485_v46 }
 0x101   : > { %1184 = vtanh.f32 %v487_v47 }
 0x10a   : > { %v1183_v48 = vpop.eup %1182 }
 0x10b   : > { %v490_v50 = vadd.f32 1.0, %v1183_v48 }
 0x10d   : > { %v492_v51 = vmul.f32 %v490_v50, %v476_v49 }
 0x10e   : > { %v1185_v52 = vpop.eup %1184 }
 0x10f   : > { %v491_v54 = vadd.f32 1.0, %v1185_v52  ;;  %498 = vst.msk [vmem:[#allocation2 + $0x1] sm:$0xff] %vm497_vm2, %v492_v51 }
 0x111   : > { %v493_v55 = vmul.f32 %v491_v54, %v477_v53  ;;  %v779_v54 = vlaneseq }
 0x113   : > { %499 = vst.msk [vmem:[#allocation2 + $0x9] sm:$0xff] %vm497_vm2, %v493_v55  ;;  %v780_v55 = vshrl.u32 %v779_v54, 7 }
 0x116   : > { %v511_v56 = vld [vmem:[#allocation2 + $0x1] sm:$0xff] }
 0x117   : > { %v500_v3 = vld [vmem:[#allocation2] sm:$0xff] }
 0x11a   : > { %v512_v58 = vld [vmem:[#allocation2 + $0x9] sm:$0xff] }
 0x11b   : > { %v659_v59 = vld [vmem:[#allocation2 + $0x2] sm:$0xff]  ;;  %v660_v60 = vld [vmem:[#allocation2 + $0xa] sm:$0xff]  ;;  %v513_v61 = vpack.c.bf16 %v512_v58, %v511_v56  ;;  %v781_v56 = vsub.s32 0, %v780_v55  ;;  %v785_v58 = vsub.s32 1, %v780_v55 }
 0x11c   : > { %v661_v62 = vpack.c.bf16 %v660_v60, %v659_v59  ;;  %v501_v2 = vld [vmem:[#allocation2 + $0x8] sm:$0xff]  ;;  %v875_v60 = vunpack.c.l.bf16 %v1296_v11 }
 0x11d   : > { %1102 = vmatmul.mubr.msk.bf16.vlgmr.msra.gmra.mxu1 %vm497_vm2, %v513_v61  ;;  %v502_v4 = vpack.c.bf16 %v501_v2, %v500_v3 }
 0x11e   : > { %1126 = vmatmul.mubr.msk.bf16.vlgmr.msra.gmra.mxu0 %vm497_vm2, %v661_v62  ;;  %1106 = vmatpush3.bf16.msra.mxu1 %v1166_v57  ;;  %v777_v57 = vld [vmem:[%s1431_s6] sm:$0x3] }
 0x11f   : > { %1113 = vmatprep.mubr.msk.bf16.mxu1 %vm1207_vm1, %v1206_v21  ;;  %1107 = vmatprep.subr.bf16.mxu1 %v1206_v21  ;;  %v782_v59 = vrot.slane %v777_v57, %v781_v56  ;;  %v786_v61 = vrot.slane %v777_v57, %v785_v58 }
 0x122   : > { %1108 = vmatpush3.bf16.msra.mxu1 %v1167_v63 }
 0x123   : > { %1109 = vmatprep.subr.bf16.mxu1 %v1206_v21 }
 0x126   : > { %1110 = vmatpush3.bf16.msra.mxu1 %v1168_v0  ;;  %v876_v0 = vunpack.c.h.bf16 %v1296_v11 }
 0x127   : > { %1111 = vmatprep.subr.bf16.mxu1 %v1206_v21 }
 0x12a   : > { %1112 = vmatpush3.bf16.msra.mxu1 %v1169_v1 }
 0x12b   : > { %840 = vmatprep.subr.bf16.mxu1 %v1172_v6 }
 0x12d   : > { %1114 = vmatmul.mubr.msk.bf16.vlgmr.msra.gmra.mxu1 %vm497_vm2, %v502_v4  ;;  %v877_v4 = vunpack.c.l.bf16 %v1298_v12 }
 0x12e   : > { %841 = vmatpush1.bf16.msra.mxu1 %v1170_v5  ;;  %864 = vmatprep.mubr.bf16.mxu1 %v1208_v9 }
 0x12f   : > { %842 = vmatprep.subr.bf16.mxu1 %v1175_v7 }
 0x132   : > { %843 = vmatpush1.bf16.msra.mxu1 %v1173_v8 }
 0x133   : > { %844 = vmatprep.subr.bf16.mxu1 %v1178_v10  ;;  %v878_v10 = vunpack.c.h.bf16 %v1298_v12 }
 0x136   : > { %845 = vmatpush1.bf16.msra.mxu1 %v1176_v13 }
 0x137   : > { %846 = vmatprep.subr.bf16.mxu1 %v1181_v14 }
 0x13a   : > { %847 = vmatpush1.bf16.msra.mxu1 %v1179_v15 }
 0x1dd   : > { %v584_v16 = vpop.f32.mrf.mxu1 }
 0x1de   : > { %v732_v17 = vpop.f32.mrf.mxu0 }
 0x1df   : > { %v1103_v18 = vpop.f32.mrf.mxu1 }
 0x1e0   : > { %v1127_v19 = vpop.f32.mrf.mxu0 }
 0x1e1   : > { %v587_v20 = vpop.f32.mrf.mxu1 }
 0x1e2   : > { %v735_v21 = vpop.f32.mrf.mxu0 }
 0x1e3   : > { %v1104_v22 = vpop.f32.mrf.mxu1 }
 0x1e4   : > { %v1128_v23 = vpop.f32.mrf.mxu0 }
 0x1ed   : > { %v652_v24 = vpop.f32.mrf.mxu1 }
 0x1ee   : > { %v653_v25 = vadd.f32 %v652_v24, %v584_v16 }
 0x1ef   : > { %v1115_v27 = vpop.f32.mrf.mxu1 }
 0x1f0   : > { %v739_v28 = vadd.f32 %v732_v17, %v653_v25 }
 0x1f1   : > { %v655_v29 = vpop.f32.mrf.mxu1 }
 0x1f2   : > { %v748_v30 = vadd.f32 %v1042_v26, %v739_v28  ;;  %v656_v31 = vadd.f32 %v655_v29, %v587_v20 }
 0x1f3   : > { %v1116_v32 = vpop.f32.mrf.mxu1 }
 0x1f4   : > { %v752_v33 = vmul.f32 %v748_v30, %v748_v30  ;;  %v740_v34 = vadd.f32 %v735_v21, %v656_v31  ;;  %v750_v48 = vmul.f32 0.5, %v748_v30 }
 0x1f6   : > { %v754_v35 = vmul.f32 %v752_v33, %v748_v30  ;;  %v749_v36 = vadd.f32 %v1042_v26, %v740_v34 }
 0x1f8   : > { %v756_v37 = vmul.f32 0.044715, %v754_v35  ;;  %v753_v38 = vmul.f32 %v749_v36, %v749_v36  ;;  %v751_v49 = vmul.f32 0.5, %v749_v36 }
 0x1fa   : > { %v758_v39 = vadd.f32 %v756_v37, %v748_v30  ;;  %v755_v40 = vmul.f32 %v753_v38, %v749_v36 }
 0x1fc   : > { %v760_v41 = vmul.f32 0.7978846, %v758_v39  ;;  %v757_v42 = vmul.f32 0.044715, %v755_v40 }
 0x1fe   : > { %1186 = vtanh.f32 %v760_v41  ;;  %v759_v43 = vadd.f32 %v757_v42, %v749_v36 }
 0x200   : > { %v761_v44 = vmul.f32 0.7978846, %v759_v43 }
 0x202   : > { %1188 = vtanh.f32 %v761_v44 }
 0x20b   : > { %v1187_v45 = vpop.eup %1186 }
 0x20c   : > { %v764_v46 = vadd.f32 1.0, %v1187_v45 }
 0x20e   : > { %v766_v51 = vmul.f32 %v764_v46, %v750_v48 }
 0x20f   : > { %v1189_v47 = vpop.eup %1188 }
 0x210   : > { %v765_v50 = vadd.f32 1.0, %v1189_v47 }
 0x212   : > { %v767_v52 = vmul.f32 %v765_v50, %v751_v49 }
 0x214   : > { %v768_v53 = vpack.c.bf16 %v767_v52, %v766_v51 }
 0x216   : > { %1051 = vmatmul.mubr.msk.bf16.vlgmr.msra.gmra.mxu1 %vm497_vm2, %v768_v53 }
 0x2d6   : > { %v866_v62 = vpop.f32.mrf.mxu1 }
 0x2d7   : > { %v867_v63 = vadd.f32 %v866_v62, %v782_v59 }
 0x2d8   : > { %v868_v1 = vpop.f32.mrf.mxu1 }
 0x2d9   : > { %v879_v2 = vadd.f32 %v875_v60, %v867_v63  ;;  %v869_v3 = vadd.f32 %v868_v1, %v786_v61 }
 0x2da   : > { %v870_v5 = vpop.f32.mrf.mxu1 }
 0x2db   : > { %v887_v6 = vmul.f32 %v879_v2, %v879_v2  ;;  %v880_v7 = vadd.f32 %v876_v0, %v869_v3  ;;  %v871_v8 = vadd.f32 %v870_v5, %v782_v59  ;;  %v883_v34 = vmul.f32 0.5, %v879_v2 }
 0x2dc   : > { %v872_v9 = vpop.f32.mrf.mxu1 }
 0x2dd   : > { %v891_v13 = vmul.f32 %v887_v6, %v879_v2  ;;  %v888_v14 = vmul.f32 %v880_v7, %v880_v7  ;;  %v881_v15 = vadd.f32 %v877_v4, %v871_v8  ;;  %v873_v16 = vadd.f32 %v872_v9, %v786_v61 }
 0x2de   : > { %v884_v38 = vmul.f32 0.5, %v880_v7 }
 0x2df   : > { %v895_v17 = vmul.f32 0.044715, %v891_v13  ;;  %v892_v18 = vmul.f32 %v888_v14, %v880_v7  ;;  %v889_v19 = vmul.f32 %v881_v15, %v881_v15  ;;  %v882_v11 = vadd.f32 %v878_v10, %v873_v16 }
 0x2e0   : > { %v885_v42 = vmul.f32 0.5, %v881_v15 }
 0x2e1   : > { %v899_v20 = vadd.f32 %v895_v17, %v879_v2  ;;  %v896_v21 = vmul.f32 0.044715, %v892_v18  ;;  %v893_v22 = vmul.f32 %v889_v19, %v881_v15  ;;  %v890_v23 = vmul.f32 %v882_v11, %v882_v11 }
 0x2e2   : > { %v886_v46 = vmul.f32 0.5, %v882_v11 }
 0x2e3   : > { %v903_v24 = vmul.f32 0.7978846, %v899_v20  ;;  %v900_v25 = vadd.f32 %v896_v21, %v880_v7  ;;  %v897_v26 = vmul.f32 0.044715, %v893_v22  ;;  %v894_v27 = vmul.f32 %v890_v23, %v882_v11 }
 0x2e5   : > { %1190 = vtanh.f32 %v903_v24  ;;  %v904_v28 = vmul.f32 0.7978846, %v900_v25  ;;  %v901_v12 = vadd.f32 %v897_v26, %v881_v15  ;;  %v898_v29 = vmul.f32 0.044715, %v894_v27 }
 0x2e7   : > { %1192 = vtanh.f32 %v904_v28  ;;  %v905_v30 = vmul.f32 0.7978846, %v901_v12  ;;  %v902_v31 = vadd.f32 %v898_v29, %v882_v11 }
 0x2e9   : > { %1194 = vtanh.f32 %v905_v30  ;;  %v906_v32 = vmul.f32 0.7978846, %v902_v31 }
 0x2eb   : > { %1196 = vtanh.f32 %v906_v32 }
 0x2f2   : > { %v1191_v33 = vpop.eup %1190 }
 0x2f3   : > { %v911_v35 = vadd.f32 1.0, %v1191_v33 }
 0x2f4   : > { %v1193_v36 = vpop.eup %1192 }
 0x2f5   : > { %v915_v37 = vmul.f32 %v911_v35, %v883_v34  ;;  %v912_v39 = vadd.f32 1.0, %v1193_v36 }
 0x2f6   : > { %v1195_v40 = vpop.eup %1194 }
 0x2f7   : > { %919 = vst [vmem:[%s285_s27] sm:$0xff] %v915_v37  ;;  %v916_v41 = vmul.f32 %v912_v39, %v884_v38  ;;  %v913_v43 = vadd.f32 1.0, %v1195_v40 }
 0x2f8   : > { %v1197_v44 = vpop.eup %1196 }
 0x2f9   : > { %920 = vst [vmem:[%s285_s27 + $0x8] sm:$0xff] %v916_v41  ;;  %v917_v45 = vmul.f32 %v913_v43, %v885_v42  ;;  %v914_v47 = vadd.f32 1.0, %v1197_v44 }
 0x2fb   : > { %921 = vst [vmem:[%s285_s27 + $0x10] sm:$0xff] %v917_v45  ;;  %v918_v48 = vmul.f32 %v914_v47, %v886_v46 }
 0x2fd   : > { %922 = vst [vmem:[%s285_s27 + $0x18] sm:$0xff] %v918_v48 }
 0x2fe PF: > { %s17_s24 = sadd.s32 1, %s1204_s24  }
 0x2ff   : > { %p14_p4 = scmp.ge.s32.totalorder %s17_s24, 4  }
 0x301   :  { %16 = sbr.rel (!%p14_p4) target bundleno = 1 (0x1), region = 80 }

</bundles_post_ra>
